<compile_context>
chip_gen: v6e
topology: v6e:2x2x1
jax: 0.10.0
libtpu: 0.0.40
codegen_flags: <defaults>
</compile_context>

<pallas_src>
import functools

import jax
import jax.numpy as jnp
import numpy as np
from jax.experimental import pallas as pl
from jax.experimental.pallas import tpu as pltpu


# ----------------------------------------------------------------------------
# Kernel
# ----------------------------------------------------------------------------
def decoder_kernel(
    xatt_ref,     # [B*S, Hd+D2] bf16  cat(hidden replicated over S, enc)  (attention input)
    enc_ref,      # [B, S, D2]   f32   encoder outputs, batch-major
    emb_ref,      # [B, E]       f32   embedded input token
    hid_ref,      # [B, Hd]      f32   previous decoder hidden state
    mask_ref,     # [B, S]       f32   1.0 keep / 0.0 masked
    wa_ref,       # [Hd+D2, Hd]  bf16  attention.attn weight (fused, transposed)
    ba_ref,       # [1, Hd]      f32
    v_ref,        # [1, Hd]      f32   attention.v weight (row vector)
    wih_ref,      # [E+D2, 3Hd]  bf16  GRU W_ih (fused, transposed)
    bih_ref,      # [1, 3Hd]     f32
    whh_ref,      # [Hd, 3Hd]    bf16  GRU W_hh (transposed)
    bhh_ref,      # [1, 3Hd]     f32
    wfc_ref,      # [Hd+D2+E, TILE_V] bf16  fc_out weight tile
    bfc_ref,      # [1, TILE_V]  f32
    pred_ref,     # out [B, TILE_V] f32
    hid_out_ref,  # out [B, Hd]     f32  (aliased with hid input in HBM)
    a_ref,        # out [B, S]      f32
    xg_ref,       # scratch [B, E+D2]     bf16  GRU input  = cat(emb, weighted)
    y_ref,        # scratch [B, Hd+D2+E]  bf16  fc_out input, reused across V tiles
):
    B, S, D2 = enc_ref.shape
    Hd = hid_ref.shape[1]
    E = emb_ref.shape[1]

    # Attention + weighted context + GRU step: computed once, results kept in
    # resident output blocks / VMEM scratch across all vocabulary tiles.
    @pl.when(pl.program_id(0) == 0)
    def _attention_and_gru():
        # ---- attention energies: single K=(Hd+D2) bf16 matmul, f32 accumulate
        energy = jnp.tanh(
            jnp.dot(xatt_ref[...], wa_ref[...],
                    preferred_element_type=jnp.float32)
            + ba_ref[...])                                            # [B*S, Hd] f32

        # ---- v projection as VPU multiply + lane reduce (no N=1 MXU matmul)
        scores = jnp.sum(energy * v_ref[...], axis=-1,
                         keepdims=True).reshape(B, S)                 # [B, S]
        scores = jnp.where(mask_ref[...] == 0.0, -1e10, scores)

        s_max = jnp.max(scores, axis=1, keepdims=True)
        s_exp = jnp.exp(scores - s_max)
        a = s_exp / jnp.sum(s_exp, axis=1, keepdims=True)             # [B, S]
        a_ref[...] = a

        # ---- weighted context: sum_s a[b,s] * enc[b,s,:]  (VPU + sublane reduce)
        weighted = jnp.sum(a[:, :, None] * enc_ref[...], axis=1)      # [B, D2] f32

        emb = emb_ref[...]
        hid = hid_ref[...]
        emb_bf = emb.astype(jnp.bfloat16)
        w_bf = weighted.astype(jnp.bfloat16)

        # ---- GRU step with fused K=(E+D2) input matmul ----------------------
        xg_ref[:, 0:E] = emb_bf
        xg_ref[:, E:E + D2] = w_bf
        gx = (jnp.dot(xg_ref[...], wih_ref[...],
                      preferred_element_type=jnp.float32) + bih_ref[...])     # [B, 3Hd]
        gh = (jnp.dot(hid.astype(jnp.bfloat16), whh_ref[...],
                      preferred_element_type=jnp.float32) + bhh_ref[...])     # [B, 3Hd]

        r = jax.nn.sigmoid(gx[:, 0:Hd] + gh[:, 0:Hd])
        z = jax.nn.sigmoid(gx[:, Hd:2 * Hd] + gh[:, Hd:2 * Hd])
        n = jnp.tanh(gx[:, 2 * Hd:3 * Hd] + r * gh[:, 2 * Hd:3 * Hd])
        h_new = (1.0 - z) * n + z * hid                               # [B, Hd]
        hid_out_ref[...] = h_new

        # ---- stage fc_out input y = cat(h_new, weighted, emb) as bf16 -------
        y_ref[:, 0:Hd] = h_new.astype(jnp.bfloat16)
        y_ref[:, Hd:Hd + D2] = w_bf
        y_ref[:, Hd + D2:Hd + D2 + E] = emb_bf

    # ---- fc_out, vocabulary tile j: [B, K_fc] @ [K_fc, TILE_V] --------------
    pred_ref[...] = (
        jnp.dot(y_ref[...], wfc_ref[...], preferred_element_type=jnp.float32)
        + bfc_ref[...])


# ----------------------------------------------------------------------------
# Wrapper
# ----------------------------------------------------------------------------
@functools.partial(jax.jit, static_argnames=("tile_v",))
def decoder_forward(params, input_ids, hidden, encoder_outputs, mask, *, tile_v=1024):
    # input_ids:        [B]            int32
    # hidden:           [B, Hd]        f32
    # encoder_outputs:  [S, B, 2*He]   f32  (PyTorch seq-major)
    # mask:             [B, S]         f32  (1.0 = keep, 0.0 = masked)
    B = input_ids.shape[0]
    S = encoder_outputs.shape[0]
    D2 = encoder_outputs.shape[2]
    Hd = hidden.shape[1]
    E = params["emb_table"].shape[1]
    V = params["bfc"].shape[1]
    K_fc = Hd + D2 + E

    # --- plain-JAX glue (tiny vs. the weight traffic that dominates a step) --
    embedded = jnp.take(params["emb_table"], input_ids, axis=0)       # [B, E]
    enc_b = jnp.transpose(encoder_outputs, (1, 0, 2))                 # [B, S, D2]
    enc_flat = enc_b.reshape(B * S, D2)                               # [B*S, D2]
    hid_rep = jnp.repeat(hidden, S, axis=0)                           # [B*S, Hd]
    # bf16 attention input; (hidden | enc) cat order matches the Linear weight.
    xatt = jnp.concatenate([hid_rep, enc_flat], axis=1).astype(jnp.bfloat16)

    # --- vocabulary tiling ----------------------------------------------------
    TILE_V = V if V <= tile_v else tile_v
    if TILE_V < V:
        assert TILE_V % 128 == 0 and V % TILE_V == 0, "pick TILE_V | V, mult of 128"
    nv = pl.cdiv(V, TILE_V)

    operands = (
        xatt, enc_b, embedded, hidden, mask,
        params["wa"], params["ba"], params["v"],
        params["wih"], params["bih"], params["whh"], params["bhh"],
        params["wfc"], params["bfc"],
    )

    def full(shape):
        return pl.BlockSpec(shape, lambda j, _r=len(shape): (0,) * _r)

    in_specs = [
        full(xatt.shape), full(enc_b.shape), full(embedded.shape),
        full(hidden.shape), full(mask.shape),
        full(params["wa"].shape), full(params["ba"].shape), full(params["v"].shape),
        full(params["wih"].shape), full(params["bih"].shape),
        full(params["whh"].shape), full(params["bhh"].shape),
        pl.BlockSpec((K_fc, TILE_V), lambda j: (0, j)),   # fc weight streamed per tile
        pl.BlockSpec((1, TILE_V), lambda j: (0, j)),      # fc bias streamed per tile
    ]
    out_specs = (
        pl.BlockSpec((B, TILE_V), lambda j: (0, j)),      # prediction tile
        pl.BlockSpec((B, Hd), lambda j: (0, 0)),          # new hidden (resident)
        pl.BlockSpec((B, S), lambda j: (0, 0)),           # attention weights (resident)
    )

    # Advisory cost hint for the XLA scheduler around the custom call.
    flops = int(
        2 * B * S * (Hd + D2) * Hd      # attention matmul
        + 2 * B * S * Hd                # v reduce
        + 2 * B * S * D2                # weighted context
        + 2 * B * (E + D2) * 3 * Hd     # GRU x-path
        + 2 * B * Hd * 3 * Hd           # GRU h-path
        + 2 * B * K_fc * V)             # fc_out
    transcendentals = int(B * S * Hd + B * S + 3 * B * Hd)
    bytes_accessed = int(
        sum(int(np.prod(x.shape)) * x.dtype.itemsize for x in operands)
        + (B * V + B * Hd + B * S) * 4)

    pred, hid_new, a = pl.pallas_call(
        decoder_kernel,
        grid=(nv,),
        out_shape=(
            jax.ShapeDtypeStruct((B, V), jnp.float32),    # prediction
            jax.ShapeDtypeStruct((B, Hd), jnp.float32),   # new hidden
            jax.ShapeDtypeStruct((B, S), jnp.float32),    # attention weights
        ),
        in_specs=in_specs,
        out_specs=out_specs,
        scratch_shapes=[
            pltpu.VMEM((B, E + D2), jnp.bfloat16),        # GRU input staging
            pltpu.VMEM((B, K_fc), jnp.bfloat16),          # fc_out input, reused per tile
        ],
        input_output_aliases={3: 1},                      # hidden -> new hidden (in place)
        compiler_params=pltpu.CompilerParams(
            # V tiles share the j==0 attention/GRU state in scratch, so the
            # axis is sequential ("arbitrary"); on v7x one could recompute the
            # tiny attention/GRU per tile and mark it "parallel" instead.
            dimension_semantics=("arbitrary",),
            vmem_limit_bytes=32 * 1024 * 1024,
        ),
        cost_estimate=pl.CostEstimate(
            flops=flops, transcendentals=transcendentals,
            bytes_accessed=bytes_accessed),
    )(*operands)
    return pred, hid_new, a


# ----------------------------------------------------------------------------
# Pure-JAX reference (mirrors PyTorch semantics and the kernel's bf16 matmul
# operand rounding with f32 accumulation) for correctness checking.
# ----------------------------------------------------------------------------
def decoder_reference(params, input_ids, hidden, encoder_outputs, mask):
    embedded = jnp.take(params["emb_table"], input_ids, axis=0)       # [B, E]
    enc = jnp.transpose(encoder_outputs, (1, 0, 2))                   # [B, S, D2]
    B, S, D2 = enc.shape
    Hd = hidden.shape[1]

    def mm(x, w):  # bf16 operands, f32 accumulation (mirrors the MXU path)
        return jnp.dot(x.astype(jnp.bfloat16).astype(jnp.float32),
                       w.astype(jnp.float32),
                       precision=jax.lax.Precision.HIGHEST)

    xatt = jnp.concatenate(
        [jnp.repeat(hidden, S, axis=0), enc.reshape(B * S, D2)], axis=1)
    energy = jnp.tanh(mm(xatt, params["wa"]) + params["ba"])          # [B*S, Hd]
    scores = jnp.sum(energy * params["v"], axis=-1).reshape(B, S)
    scores = jnp.where(mask == 0.0, -1e10, scores)
    a = jax.nn.softmax(scores, axis=1)
    weighted = jnp.einsum("bs,bsd->bd", a, enc)

    xg = jnp.concatenate([embedded, weighted], axis=1)
    gx = mm(xg, params["wih"]) + params["bih"]
    gh = mm(hidden, params["whh"]) + params["bhh"]
    r = jax.nn.sigmoid(gx[:, :Hd] + gh[:, :Hd])
    z = jax.nn.sigmoid(gx[:, Hd:2 * Hd] + gh[:, Hd:2 * Hd])
    n = jnp.tanh(gx[:, 2 * Hd:] + r * gh[:, 2 * Hd:])
    h_new = (1.0 - z) * n + z * hidden

    y = jnp.concatenate([h_new, weighted, embedded], axis=1)
    pred = mm(y, params["wfc"]) + params["bfc"]
    return pred, h_new, a


def init_params(key, output_dim, emb_dim, enc_hid_dim, dec_hid_dim):
    V, E, He, Hd = output_dim, emb_dim, enc_hid_dim, dec_hid_dim
    D2 = 2 * He
    ks = jax.random.split(key, 10)

    def w(k, shape, scale=0.1):
        return (scale * jax.random.normal(k, shape)).astype(jnp.float32)

    # PyTorch-shaped weights, then transposed/fused for the kernel.
    emb_table = w(ks[0], (V, E))
    attn_w = w(ks[1], (Hd, Hd + D2))      # Linear(Hd+2He -> Hd), cat order (hidden, enc)
    attn_b = w(ks[2], (Hd,))
    v_w = w(ks[3], (1, Hd))               # Linear(Hd -> 1, bias=False)
    w_ih = w(ks[4], (3 * Hd, E + D2))     # GRU input weights, x = cat(embedded, weighted)
    w_hh = w(ks[5], (3 * Hd, Hd))
    b_ih = w(ks[6], (3 * Hd,))
    b_hh = w(ks[7], (3 * Hd,))
    fc_w = w(ks[8], (V, Hd + D2 + E))     # Linear(Hd+2He+E -> V), cat order (out, weighted, emb)
    fc_b = w(ks[9], (V,))

    return {
        "emb_table": emb_table,                              # f32 [V, E]
        "wa": attn_w.T.astype(jnp.bfloat16),                 # [Hd+D2, Hd]
        "ba": attn_b.reshape(1, Hd),                         # f32
        "v": v_w,                                            # f32 [1, Hd]
        "wih": w_ih.T.astype(jnp.bfloat16),                  # [E+D2, 3Hd]
        "bih": b_ih.reshape(1, 3 * Hd),
        "whh": w_hh.T.astype(jnp.bfloat16),                  # [Hd, 3Hd]
        "bhh": b_hh.reshape(1, 3 * Hd),
        "wfc": fc_w.T.astype(jnp.bfloat16),                  # [Hd+D2+E, V]
        "bfc": fc_b.reshape(1, V),
    }


if __name__ == "__main__":
    # Small shapes consistent with the module's forward.
    B, S = 2, 8
    output_dim, emb_dim, enc_hid_dim, dec_hid_dim = 256, 32, 32, 32
    D2 = 2 * enc_hid_dim

    key = jax.random.PRNGKey(0)
    kp, k1, k2, k3, k4 = jax.random.split(key, 5)

    params = init_params(kp, output_dim, emb_dim, enc_hid_dim, dec_hid_dim)

    input_ids = jax.random.randint(k1, (B,), 0, output_dim, dtype=jnp.int32)      # [B]
    hidden = jax.random.normal(k2, (B, dec_hid_dim), dtype=jnp.float32)           # [B, Hd]
    encoder_outputs = jax.random.normal(k3, (S, B, D2), dtype=jnp.float32)        # [S, B, 2He]
    # mask: first position always valid, rest random 0/1
    mask = (jax.random.uniform(k4, (B, S)) > 0.3).astype(jnp.float32)
    mask = mask.at[:, 0].set(1.0)

    # tile_v=128 -> 2 vocabulary tiles: exercises the streamed fc_out grid.
    pred, hid_new, attn = decoder_forward(params, input_ids, hidden,
                                          encoder_outputs, mask, tile_v=128)
    jax.block_until_ready((pred, hid_new, attn))

    # Verify against pure-JAX reference (same bf16 weight rounding).
    pred_r, hid_r, attn_r = decoder_reference(params, input_ids, hidden,
                                              encoder_outputs, mask)
    np.testing.assert_allclose(np.asarray(pred), np.asarray(pred_r), rtol=5e-4, atol=5e-4)
    np.testing.assert_allclose(np.asarray(hid_new), np.asarray(hid_r), rtol=5e-4, atol=5e-4)
    np.testing.assert_allclose(np.asarray(attn), np.asarray(attn_r), rtol=5e-4, atol=5e-4)

    assert pred.shape == (B, output_dim)
    assert hid_new.shape == (B, dec_hid_dim)
    assert attn.shape == (B, S)

    print("KERNEL_OK")
</pallas_src>

<mosaic_0001>
module attributes {stable_mosaic.version = 11 : i64} {
  func.func @decoder_kernel(%arg0: i32, %arg1: memref<16x96xbf16, #tpu.memory_space<vmem>>, %arg2: memref<2x8x64xf32, #tpu.memory_space<vmem>>, %arg3: memref<2x32xf32, #tpu.memory_space<vmem>>, %arg4: memref<2x32xf32, #tpu.memory_space<vmem>>, %arg5: memref<2x8xf32, #tpu.memory_space<vmem>>, %arg6: memref<96x32xbf16, #tpu.memory_space<vmem>>, %arg7: memref<1x32xf32, #tpu.memory_space<vmem>>, %arg8: memref<1x32xf32, #tpu.memory_space<vmem>>, %arg9: memref<96x96xbf16, #tpu.memory_space<vmem>>, %arg10: memref<1x96xf32, #tpu.memory_space<vmem>>, %arg11: memref<32x96xbf16, #tpu.memory_space<vmem>>, %arg12: memref<1x96xf32, #tpu.memory_space<vmem>>, %arg13: memref<128x128xbf16, #tpu.memory_space<vmem>>, %arg14: memref<1x128xf32, #tpu.memory_space<vmem>>, %arg15: memref<2x128xf32, #tpu.memory_space<vmem>>, %arg16: memref<2x32xf32, #tpu.memory_space<vmem>>, %arg17: memref<2x8xf32, #tpu.memory_space<vmem>>, %arg18: memref<2x96xbf16, #tpu.memory_space<vmem>>, %arg19: memref<2x128xbf16, #tpu.memory_space<vmem>>) attributes {dimension_semantics = [#tpu.dimension_semantics<arbitrary>], iteration_bounds = array<i64: 2>, scalar_prefetch = 0 : i64, scratch_operands = 2 : i64, tpu.core_type = #tpu.core_type<tc>, window_params = [{pipeline_mode = #tpu.pipeline_mode<synchronous>, transform_indices = @transform_0, window_bounds = array<i64: 16, 96>}, {pipeline_mode = #tpu.pipeline_mode<synchronous>, transform_indices = @transform_1, window_bounds = array<i64: 2, 8, 64>}, {pipeline_mode = #tpu.pipeline_mode<synchronous>, transform_indices = @transform_2, window_bounds = array<i64: 2, 32>}, {pipeline_mode = #tpu.pipeline_mode<synchronous>, transform_indices = @transform_3, window_bounds = array<i64: 2, 32>}, {pipeline_mode = #tpu.pipeline_mode<synchronous>, transform_indices = @transform_4, window_bounds = array<i64: 2, 8>}, {pipeline_mode = #tpu.pipeline_mode<synchronous>, transform_indices = @transform_5, window_bounds = array<i64: 96, 32>}, {pipeline_mode = #tpu.pipeline_mode<synchronous>, transform_indices = @transform_6, window_bounds = array<i64: 1, 32>}, {pipeline_mode = #tpu.pipeline_mode<synchronous>, transform_indices = @transform_7, window_bounds = array<i64: 1, 32>}, {pipeline_mode = #tpu.pipeline_mode<synchronous>, transform_indices = @transform_8, window_bounds = array<i64: 96, 96>}, {pipeline_mode = #tpu.pipeline_mode<synchronous>, transform_indices = @transform_9, window_bounds = array<i64: 1, 96>}, {pipeline_mode = #tpu.pipeline_mode<synchronous>, transform_indices = @transform_10, window_bounds = array<i64: 32, 96>}, {pipeline_mode = #tpu.pipeline_mode<synchronous>, transform_indices = @transform_11, window_bounds = array<i64: 1, 96>}, {transform_indices = @transform_12, window_bounds = array<i64: 128, 128>}, {transform_indices = @transform_13, window_bounds = array<i64: 1, 128>}, {transform_indices = @transform_14, window_bounds = array<i64: 2, 128>}, {pipeline_mode = #tpu.pipeline_mode<synchronous>, transform_indices = @transform_15, window_bounds = array<i64: 2, 32>}, {pipeline_mode = #tpu.pipeline_mode<synchronous>, transform_indices = @transform_16, window_bounds = array<i64: 2, 8>}]} {
    %c0_i32 = arith.constant 0 : i32
    %0 = arith.cmpi eq, %arg0, %c0_i32 : i32
    %1 = arith.extui %0 : i1 to i32
    %c0_i32_0 = arith.constant 0 : i32
    %2 = arith.cmpi ne, %1, %c0_i32_0 : i32
    scf.if %2 {
      %c0_8 = arith.constant 0 : index
      %c0_9 = arith.constant 0 : index
      %10 = vector.load %arg1[%c0_8, %c0_9] : memref<16x96xbf16, #tpu.memory_space<vmem>>, vector<16x96xbf16>
      %c0_10 = arith.constant 0 : index
      %c0_11 = arith.constant 0 : index
      %11 = vector.load %arg6[%c0_10, %c0_11] : memref<96x32xbf16, #tpu.memory_space<vmem>>, vector<96x32xbf16>
      %cst_12 = arith.constant dense<0.000000e+00> : vector<16x32xf32>
      %12 = tpu.matmul %10, %11, %cst_12 {dimension_numbers = #tpu.dot_dimension_numbers<[1], [0], [0], [1], [0, 0, 1, 1], [], []>} : vector<16x96xbf16>, vector<96x32xbf16>, vector<16x32xf32> -> vector<16x32xf32>
      %c0_13 = arith.constant 0 : index
      %c0_14 = arith.constant 0 : index
      %13 = vector.load %arg7[%c0_13, %c0_14] : memref<1x32xf32, #tpu.memory_space<vmem>>, vector<1x32xf32>
      %14 = vector.broadcast %13 : vector<1x32xf32> to vector<16x32xf32>
      %15 = arith.addf %12, %14 : vector<16x32xf32>
      %16 = math.tanh %15 : vector<16x32xf32>
      %c0_15 = arith.constant 0 : index
      %c0_16 = arith.constant 0 : index
      %17 = vector.load %arg8[%c0_15, %c0_16] : memref<1x32xf32, #tpu.memory_space<vmem>>, vector<1x32xf32>
      %18 = vector.broadcast %17 : vector<1x32xf32> to vector<16x32xf32>
      %19 = arith.mulf %16, %18 : vector<16x32xf32>
      %cst_17 = arith.constant dense<0.000000e+00> : vector<16xf32>
      %20 = vector.multi_reduction <add>, %19, %cst_17 [1] : vector<16x32xf32> to vector<16xf32>
      %21 = vector.shape_cast %20 : vector<16xf32> to vector<16x1xf32>
      %22 = vector.shape_cast %21 : vector<16x1xf32> to vector<2x8xf32>
      %c0_18 = arith.constant 0 : index
      %c0_19 = arith.constant 0 : index
      %23 = vector.load %arg5[%c0_18, %c0_19] : memref<2x8xf32, #tpu.memory_space<vmem>>, vector<2x8xf32>
      %cst_20 = arith.constant 0.000000e+00 : f32
      %24 = vector.broadcast %cst_20 : f32 to vector<2x8xf32>
      %25 = arith.cmpf oeq, %23, %24 : vector<2x8xf32>
      %cst_21 = arith.constant -1.000000e+10 : f32
      %26 = vector.broadcast %cst_21 : f32 to vector<2x8xf32>
      %27 = arith.select %25, %26, %22 : vector<2x8xi1>, vector<2x8xf32>
      %cst_22 = arith.constant dense<0xFF800000> : vector<2xf32>
      %28 = vector.multi_reduction <maximumf>, %27, %cst_22 [1] : vector<2x8xf32> to vector<2xf32>
      %29 = vector.shape_cast %28 : vector<2xf32> to vector<2x1xf32>
      %30 = vector.broadcast %29 : vector<2x1xf32> to vector<2x8xf32>
      %31 = arith.subf %27, %30 : vector<2x8xf32>
      %32 = math.exp %31 : vector<2x8xf32>
      %cst_23 = arith.constant dense<0.000000e+00> : vector<2xf32>
      %33 = vector.multi_reduction <add>, %32, %cst_23 [1] : vector<2x8xf32> to vector<2xf32>
      %34 = vector.shape_cast %33 : vector<2xf32> to vector<2x1xf32>
      %35 = vector.broadcast %34 : vector<2x1xf32> to vector<2x8xf32>
      %36 = arith.divf %32, %35 : vector<2x8xf32>
      %c0_24 = arith.constant 0 : index
      %c0_25 = arith.constant 0 : index
      %37 = vector.load %arg17[%c0_24, %c0_25] : memref<2x8xf32, #tpu.memory_space<vmem>>, vector<2x8xf32>
      tpu.vector_store %arg17[%c0_24, %c0_25], %36 {strides = array<i32>} : memref<2x8xf32, #tpu.memory_space<vmem>>, vector<2x8xf32>,
      %38 = vector.shape_cast %36 : vector<2x8xf32> to vector<2x8x1xf32>
      %c0_26 = arith.constant 0 : index
      %c0_27 = arith.constant 0 : index
      %c0_28 = arith.constant 0 : index
      %39 = vector.load %arg2[%c0_26, %c0_27, %c0_28] : memref<2x8x64xf32, #tpu.memory_space<vmem>>, vector<2x8x64xf32>
      %40 = vector.broadcast %38 : vector<2x8x1xf32> to vector<2x8x64xf32>
      %41 = arith.mulf %40, %39 : vector<2x8x64xf32>
      %cst_29 = arith.constant dense<0.000000e+00> : vector<2x64xf32>
      %42 = vector.multi_reduction <add>, %41, %cst_29 [1] : vector<2x8x64xf32> to vector<2x64xf32>
      %c0_30 = arith.constant 0 : index
      %c0_31 = arith.constant 0 : index
      %43 = vector.load %arg3[%c0_30, %c0_31] : memref<2x32xf32, #tpu.memory_space<vmem>>, vector<2x32xf32>
      %c0_32 = arith.constant 0 : index
      %c0_33 = arith.constant 0 : index
      %44 = vector.load %arg4[%c0_32, %c0_33] : memref<2x32xf32, #tpu.memory_space<vmem>>, vector<2x32xf32>
      %45 = arith.truncf %43 : vector<2x32xf32> to vector<2x32xbf16>
      %46 = arith.truncf %42 : vector<2x64xf32> to vector<2x64xbf16>
      %c0_34 = arith.constant 0 : index
      %c0_35 = arith.constant 0 : index
      %47 = vector.load %arg18[%c0_34, %c0_35] : memref<2x96xbf16, #tpu.memory_space<vmem>>, vector<2x32xbf16>
      tpu.vector_store %arg18[%c0_34, %c0_35], %45 {strides = array<i32>} : memref<2x96xbf16, #tpu.memory_space<vmem>>, vector<2x32xbf16>,
      %c0_36 = arith.constant 0 : index
      %c32 = arith.constant 32 : index
      %48 = vector.load %arg18[%c0_36, %c32] : memref<2x96xbf16, #tpu.memory_space<vmem>>, vector<2x64xbf16>
      tpu.vector_store %arg18[%c0_36, %c32], %46 {strides = array<i32>} : memref<2x96xbf16, #tpu.memory_space<vmem>>, vector<2x64xbf16>,
      %c0_37 = arith.constant 0 : index
      %c0_38 = arith.constant 0 : index
      %49 = vector.load %arg18[%c0_37, %c0_38] : memref<2x96xbf16, #tpu.memory_space<vmem>>, vector<2x96xbf16>
      %c0_39 = arith.constant 0 : index
      %c0_40 = arith.constant 0 : index
      %50 = vector.load %arg9[%c0_39, %c0_40] : memref<96x96xbf16, #tpu.memory_space<vmem>>, vector<96x96xbf16>
      %cst_41 = arith.constant dense<0.000000e+00> : vector<2x96xf32>
      %51 = tpu.matmul %49, %50, %cst_41 {dimension_numbers = #tpu.dot_dimension_numbers<[1], [0], [0], [1], [0, 0, 1, 1], [], []>} : vector<2x96xbf16>, vector<96x96xbf16>, vector<2x96xf32> -> vector<2x96xf32>
      %c0_42 = arith.constant 0 : index
      %c0_43 = arith.constant 0 : index
      %52 = vector.load %arg10[%c0_42, %c0_43] : memref<1x96xf32, #tpu.memory_space<vmem>>, vector<1x96xf32>
      %53 = vector.broadcast %52 : vector<1x96xf32> to vector<2x96xf32>
      %54 = arith.addf %51, %53 : vector<2x96xf32>
      %55 = arith.truncf %44 : vector<2x32xf32> to vector<2x32xbf16>
      %c0_44 = arith.constant 0 : index
      %c0_45 = arith.constant 0 : index
      %56 = vector.load %arg11[%c0_44, %c0_45] : memref<32x96xbf16, #tpu.memory_space<vmem>>, vector<32x96xbf16>
      %cst_46 = arith.constant dense<0.000000e+00> : vector<2x96xf32>
      %57 = tpu.matmul %55, %56, %cst_46 {dimension_numbers = #tpu.dot_dimension_numbers<[1], [0], [0], [1], [0, 0, 1, 1], [], []>} : vector<2x32xbf16>, vector<32x96xbf16>, vector<2x96xf32> -> vector<2x96xf32>
      %c0_47 = arith.constant 0 : index
      %c0_48 = arith.constant 0 : index
      %58 = vector.load %arg12[%c0_47, %c0_48] : memref<1x96xf32, #tpu.memory_space<vmem>>, vector<1x96xf32>
      %59 = vector.broadcast %58 : vector<1x96xf32> to vector<2x96xf32>
      %60 = arith.addf %57, %59 : vector<2x96xf32>
      %61 = vector.extract_strided_slice %54 {offsets = [0, 0], sizes = [2, 32], strides = [1, 1]} : vector<2x96xf32> to vector<2x32xf32>
      %62 = vector.extract_strided_slice %60 {offsets = [0, 0], sizes = [2, 32], strides = [1, 1]} : vector<2x96xf32> to vector<2x32xf32>
      %63 = arith.addf %61, %62 : vector<2x32xf32>
      %64 = arith.negf %63 : vector<2x32xf32>
      %65 = math.exp %64 : vector<2x32xf32>
      %cst_49 = arith.constant 1.000000e+00 : f32
      %66 = vector.broadcast %cst_49 : f32 to vector<2x32xf32>
      %67 = arith.addf %66, %65 : vector<2x32xf32>
      %68 = arith.divf %66, %67 : vector<2x32xf32>
      %69 = vector.extract_strided_slice %54 {offsets = [0, 32], sizes = [2, 32], strides = [1, 1]} : vector<2x96xf32> to vector<2x32xf32>
      %70 = vector.extract_strided_slice %60 {offsets = [0, 32], sizes = [2, 32], strides = [1, 1]} : vector<2x96xf32> to vector<2x32xf32>
      %71 = arith.addf %69, %70 : vector<2x32xf32>
      %72 = arith.negf %71 : vector<2x32xf32>
      %73 = math.exp %72 : vector<2x32xf32>
      %cst_50 = arith.constant 1.000000e+00 : f32
      %74 = vector.broadcast %cst_50 : f32 to vector<2x32xf32>
      %75 = arith.addf %74, %73 : vector<2x32xf32>
      %76 = arith.divf %74, %75 : vector<2x32xf32>
      %77 = vector.extract_strided_slice %54 {offsets = [0, 64], sizes = [2, 32], strides = [1, 1]} : vector<2x96xf32> to vector<2x32xf32>
      %78 = vector.extract_strided_slice %60 {offsets = [0, 64], sizes = [2, 32], strides = [1, 1]} : vector<2x96xf32> to vector<2x32xf32>
      %79 = arith.mulf %68, %78 : vector<2x32xf32>
      %80 = arith.addf %77, %79 : vector<2x32xf32>
      %81 = math.tanh %80 : vector<2x32xf32>
      %cst_51 = arith.constant 1.000000e+00 : f32
      %82 = vector.broadcast %cst_51 : f32 to vector<2x32xf32>
      %83 = arith.subf %82, %76 : vector<2x32xf32>
      %84 = arith.mulf %83, %81 : vector<2x32xf32>
      %85 = arith.mulf %76, %44 : vector<2x32xf32>
      %86 = arith.addf %84, %85 : vector<2x32xf32>
      %c0_52 = arith.constant 0 : index
      %c0_53 = arith.constant 0 : index
      %87 = vector.load %arg16[%c0_52, %c0_53] : memref<2x32xf32, #tpu.memory_space<vmem>>, vector<2x32xf32>
      tpu.vector_store %arg16[%c0_52, %c0_53], %86 {strides = array<i32>} : memref<2x32xf32, #tpu.memory_space<vmem>>, vector<2x32xf32>,
      %88 = arith.truncf %86 : vector<2x32xf32> to vector<2x32xbf16>
      %c0_54 = arith.constant 0 : index
      %c0_55 = arith.constant 0 : index
      %89 = vector.load %arg19[%c0_54, %c0_55] : memref<2x128xbf16, #tpu.memory_space<vmem>>, vector<2x32xbf16>
      tpu.vector_store %arg19[%c0_54, %c0_55], %88 {strides = array<i32>} : memref<2x128xbf16, #tpu.memory_space<vmem>>, vector<2x32xbf16>,
      %c0_56 = arith.constant 0 : index
      %c32_57 = arith.constant 32 : index
      %90 = vector.load %arg19[%c0_56, %c32_57] : memref<2x128xbf16, #tpu.memory_space<vmem>>, vector<2x64xbf16>
      tpu.vector_store %arg19[%c0_56, %c32_57], %46 {strides = array<i32>} : memref<2x128xbf16, #tpu.memory_space<vmem>>, vector<2x64xbf16>,
      %c0_58 = arith.constant 0 : index
      %c96 = arith.constant 96 : index
      %91 = vector.load %arg19[%c0_58, %c96] : memref<2x128xbf16, #tpu.memory_space<vmem>>, vector<2x32xbf16>
      tpu.vector_store %arg19[%c0_58, %c96], %45 {strides = array<i32>} : memref<2x128xbf16, #tpu.memory_space<vmem>>, vector<2x32xbf16>,
    } else {
    }
    %c0 = arith.constant 0 : index
    %c0_1 = arith.constant 0 : index
    %3 = vector.load %arg19[%c0, %c0_1] : memref<2x128xbf16, #tpu.memory_space<vmem>>, vector<2x128xbf16>
    %c0_2 = arith.constant 0 : index
    %c0_3 = arith.constant 0 : index
    %4 = vector.load %arg13[%c0_2, %c0_3] : memref<128x128xbf16, #tpu.memory_space<vmem>>, vector<128x128xbf16>
    %cst = arith.constant dense<0.000000e+00> : vector<2x128xf32>
    %5 = tpu.matmul %3, %4, %cst {dimension_numbers = #tpu.dot_dimension_numbers<[1], [0], [0], [1], [0, 0, 1, 1], [], []>} : vector<2x128xbf16>, vector<128x128xbf16>, vector<2x128xf32> -> vector<2x128xf32>
    %c0_4 = arith.constant 0 : index
    %c0_5 = arith.constant 0 : index
    %6 = vector.load %arg14[%c0_4, %c0_5] : memref<1x128xf32, #tpu.memory_space<vmem>>, vector<1x128xf32>
    %7 = vector.broadcast %6 : vector<1x128xf32> to vector<2x128xf32>
    %8 = arith.addf %5, %7 : vector<2x128xf32>
    %c0_6 = arith.constant 0 : index
    %c0_7 = arith.constant 0 : index
    %9 = vector.load %arg15[%c0_6, %c0_7] : memref<2x128xf32, #tpu.memory_space<vmem>>, vector<2x128xf32>
    tpu.vector_store %arg15[%c0_6, %c0_7], %8 {strides = array<i32>} : memref<2x128xf32, #tpu.memory_space<vmem>>, vector<2x128xf32>,
    return
  }
  func.func @transform_0(%arg0: i32) -> (i32, i32) {
    %c0_i32 = arith.constant 0 : i32
    %c0_i32_0 = arith.constant 0 : i32
    %c0_i32_1 = arith.constant 0 : i32
    return %c0_i32, %c0_i32_0 : i32, i32
  }
  func.func @transform_1(%arg0: i32) -> (i32, i32, i32) {
    %c0_i32 = arith.constant 0 : i32
    %c0_i32_0 = arith.constant 0 : i32
    %c0_i32_1 = arith.constant 0 : i32
    %c0_i32_2 = arith.constant 0 : i32
    return %c0_i32, %c0_i32_0, %c0_i32_1 : i32, i32, i32
  }
  func.func @transform_2(%arg0: i32) -> (i32, i32) {
    %c0_i32 = arith.constant 0 : i32
    %c0_i32_0 = arith.constant 0 : i32
    %c0_i32_1 = arith.constant 0 : i32
    return %c0_i32, %c0_i32_0 : i32, i32
  }
  func.func @transform_3(%arg0: i32) -> (i32, i32) {
    %c0_i32 = arith.constant 0 : i32
    %c0_i32_0 = arith.constant 0 : i32
    %c0_i32_1 = arith.constant 0 : i32
    return %c0_i32, %c0_i32_0 : i32, i32
  }
  func.func @transform_4(%arg0: i32) -> (i32, i32) {
    %c0_i32 = arith.constant 0 : i32
    %c0_i32_0 = arith.constant 0 : i32
    %c0_i32_1 = arith.constant 0 : i32
    return %c0_i32, %c0_i32_0 : i32, i32
  }
  func.func @transform_5(%arg0: i32) -> (i32, i32) {
    %c0_i32 = arith.constant 0 : i32
    %c0_i32_0 = arith.constant 0 : i32
    %c0_i32_1 = arith.constant 0 : i32
    return %c0_i32, %c0_i32_0 : i32, i32
  }
  func.func @transform_6(%arg0: i32) -> (i32, i32) {
    %c0_i32 = arith.constant 0 : i32
    %c0_i32_0 = arith.constant 0 : i32
    %c0_i32_1 = arith.constant 0 : i32
    return %c0_i32, %c0_i32_0 : i32, i32
  }
  func.func @transform_7(%arg0: i32) -> (i32, i32) {
    %c0_i32 = arith.constant 0 : i32
    %c0_i32_0 = arith.constant 0 : i32
    %c0_i32_1 = arith.constant 0 : i32
    return %c0_i32, %c0_i32_0 : i32, i32
  }
  func.func @transform_8(%arg0: i32) -> (i32, i32) {
    %c0_i32 = arith.constant 0 : i32
    %c0_i32_0 = arith.constant 0 : i32
    %c0_i32_1 = arith.constant 0 : i32
    return %c0_i32, %c0_i32_0 : i32, i32
  }
  func.func @transform_9(%arg0: i32) -> (i32, i32) {
    %c0_i32 = arith.constant 0 : i32
    %c0_i32_0 = arith.constant 0 : i32
    %c0_i32_1 = arith.constant 0 : i32
    return %c0_i32, %c0_i32_0 : i32, i32
  }
  func.func @transform_10(%arg0: i32) -> (i32, i32) {
    %c0_i32 = arith.constant 0 : i32
    %c0_i32_0 = arith.constant 0 : i32
    %c0_i32_1 = arith.constant 0 : i32
    return %c0_i32, %c0_i32_0 : i32, i32
  }
  func.func @transform_11(%arg0: i32) -> (i32, i32) {
    %c0_i32 = arith.constant 0 : i32
    %c0_i32_0 = arith.constant 0 : i32
    %c0_i32_1 = arith.constant 0 : i32
    return %c0_i32, %c0_i32_0 : i32, i32
  }
  func.func @transform_12(%arg0: i32) -> (i32, i32) {
    %c0_i32 = arith.constant 0 : i32
    %c0_i32_0 = arith.constant 0 : i32
    return %c0_i32, %arg0 : i32, i32
  }
  func.func @transform_13(%arg0: i32) -> (i32, i32) {
    %c0_i32 = arith.constant 0 : i32
    %c0_i32_0 = arith.constant 0 : i32
    return %c0_i32, %arg0 : i32, i32
  }
  func.func @transform_14(%arg0: i32) -> (i32, i32) {
    %c0_i32 = arith.constant 0 : i32
    %c0_i32_0 = arith.constant 0 : i32
    return %c0_i32, %arg0 : i32, i32
  }
  func.func @transform_15(%arg0: i32) -> (i32, i32) {
    %c0_i32 = arith.constant 0 : i32
    %c0_i32_0 = arith.constant 0 : i32
    %c0_i32_1 = arith.constant 0 : i32
    return %c0_i32, %c0_i32_0 : i32, i32
  }
  func.func @transform_16(%arg0: i32) -> (i32, i32) {
    %c0_i32 = arith.constant 0 : i32
    %c0_i32_0 = arith.constant 0 : i32
    %c0_i32_1 = arith.constant 0 : i32
    return %c0_i32, %c0_i32_0 : i32, i32
  }
}

</mosaic_0001>

<bundles_post_ra>
// kernel: decoder_forward.1
= control target key start
LH: loop header
LB: loop body
LE: loop exit
PB: predicated region body
PF: predicated region fallthrough
CT: control target
= control target key end

     0   :  { %s2251_s0 = inlined_call_operand.vmem [shape: bf16[16,96], index: 0, kind: input, shape index: {}]   ;;  %s2252_s1 = inlined_call_operand.vmem [shape: f32[2,8,64], index: 1, kind: input, shape index: {}]   ;;  %s2253_s2 = inlined_call_operand.vmem [shape: f32[2,32], index: 2, kind: input, shape index: {}]   ;;  %s2254_s3 = inlined_call_operand.hbm [shape: f32[2,32], index: 3, kind: input, shape index: {}, may-alias: {3,15}]   ;;  %s2255_s4 = inlined_call_operand.vmem [shape: f32[2,8], index: 4, kind: input, shape index: {}]   ;;  %s2256_s5 = inlined_call_operand.vmem [shape: bf16[96,32], index: 5, kind: input, shape index: {}]   ;;  %s2257_s6 = inlined_call_operand.vmem [shape: f32[1,32], index: 6, kind: input, shape index: {}]   ;;  %s2258_s7 = inlined_call_operand.vmem [shape: f32[1,32], index: 7, kind: input, shape index: {}]   ;;  %s2259_s8 = inlined_call_operand.vmem [shape: bf16[96,96], index: 8, kind: input, shape index: {}]   ;;  %s2260_s9 = inlined_call_operand.vmem [shape: f32[1,96], index: 9, kind: input, shape index: {}]   ;;  %s2261_s10 = inlined_call_operand.vmem [shape: bf16[32,96], index: 10, kind: input, shape index: {}]   ;;  %s2262_s11 = inlined_call_operand.vmem [shape: f32[1,96], index: 11, kind: input, shape index: {}]   ;;  %s2263_s12 = inlined_call_operand.vmem [shape: bf16[128,256], index: 12, kind: input, shape index: {}]   ;;  %s2264_s13 = inlined_call_operand.vmem [shape: f32[1,256], index: 13, kind: input, shape index: {}]   ;;  %s2265_s14 = inlined_call_operand.hbm [shape: f32[2,256], index: 14, kind: output, shape index: {0}]   ;;  %s2266_s15 = inlined_call_operand.hbm [shape: f32[2,32], index: 15, kind: output, shape index: {1}, may-alias: {3,15}]   ;;  %s2267_s16 = inlined_call_operand.hbm [shape: f32[2,8], index: 16, kind: output, shape index: {2}]  }
   0x1   :  { %2275 = sst [smem:[#allocation19_spill]] %s2251_s0 }
   0x2   :  { %2276 = sst [smem:[#allocation20_spill]] %s2252_s1 }
   0x3   :  { %2277 = sst [smem:[#allocation21_spill]] %s2253_s2 }
   0x4   :  { %2278 = sst [smem:[#allocation22_spill]] %s2254_s3 }
   0x5   :  { %2279 = sst [smem:[#allocation23_spill]] %s2265_s14 }
   0x6   :  { %22 = vsyncpa [#allocation5], 0 }
   0x7   :  { %23 = vsyncpa [#allocation6], 0 }
   0x8   :  { %25 = vsyncpa [#allocation6 + $0x1], 0 }
   0x9   :  { %26 = vsyncpa [#allocation10], 0  ;;  %s1917_s21 = smov 0   ;;  %s1919_s22 = smov 0  }
   0xa   :  { %s1921_s23 = smov 0   ;;  %s1923_s24 = smov 0  }
   0xb LB: > { %2280 = sst [smem:[#allocation15_spill]] %s1805_s21  ;;  %s1938_s25 = sadd.s32 4294967295, %s1817_s24   ;;  %s1817_s24 = sphi %s1923_s24, %s2305_s24   ;;  %s1813_s23 = sphi %s1921_s23, %s2309_s23   ;;  %s1809_s22 = sphi %s1919_s22, %s2308_s22   ;;  %s1805_s21 = sphi %s1917_s21, %s2307_s21  }
   0xc   : > { %s1428_s26 = sadd.s32 4294967294, %s1817_s24   ;;  %s1942_s27 = sadd.s32 1, %s1817_s24  }
   0xd   : > { %2281 = sst [smem:[#allocation16_spill]] %s1942_s27  ;;  %s291_s28 = sadd.s32 1, %s1813_s23 }
   0xe   : > { %s288_s29 = ssub.s32 %s1817_s24, %s1942_s27  ;;  %p298_p0 = scmp.ne.s32.totalorder %s1813_s23, %s1809_s22 }
   0xf   : > { %p289_p1 = scmp.eq.s32.totalorder %s288_s29, 0  ;;  %p299_p2 = scmp.eq.s32.totalorder %s1817_s24, 0 }
  0x10   : > { %p2268_p3 = scmp.eq.s32.totalorder %s1938_s25, 1  ;;  %p359_p4 = scmp.ne.s32.totalorder %s1809_s22, %s1805_s21 }
  0x11   : > { %s1954_s30 = scalar_select %p289_p1, %s1813_s23, %s291_s28  }
  0x12   : > { %p1956_p5 = por %p299_p2, %p298_p0  ;;  %p1962_p6 = por %p2268_p3, %p298_p0 }
  0x13   : > { %2282 = sst [smem:[#allocation17_spill]] %s1954_s30  ;;  %p360_p7 = scmp.eq.s32.totalorder %s1428_s26, 1 }
  0x14   : > { %s2284_s17 = scalar_select %p1962_p6, 1, 0 }
  0x15   : > { %p1429_p8 = scmp.ge.s32.totalorder %s1817_s24, 1  ;;  %p409_p9 = scmp.lt.s32.totalorder %s1817_s24, 3 }
  0x16   : > { %p1969_p11 = por %p360_p7, %p359_p4  ;;  %p1587_p12 = scmp.eq.s32.totalorder %s1938_s25, 0 }
  0x17   : > { %p1974_p13 = pnand %p1429_p8, %p409_p9  ;;  %s1819_s20 = smov [#allocation4]  }
  0x18   : > { %s2285_s18 = scalar_select %p1969_p11, 1, 0 }
  0x19   : > { %s431_s28 = sshll.u32 %s1819_s20, 4  ;;  %p1579_p0 = pneg %p1974_p13  ;;  %s432_s28 = int_to_ptr.vmem [resolvable:$true] %s431_s28 }
  0x1a   : > { %2286 = sst [smem:[#allocation18_spill]] %s2285_s18  ;;  %s1686_s26 = scalar_lea.vmem %s432_s28, 32 }
  0x1b   : > { %p1580_p1 = pnand %p1587_p12, %p1579_p0  ;;  %p1687_p3 = scmp.ne.s32.totalorder %s432_s28, %s1686_s26 }
  0x1c   : > { %p1694_p10 = scmp.lt.s32.totalorder %s432_s28, %s432_s28  ;;  %p1695_p11 = scmp.lt.s32.totalorder %s1686_s26, %s1686_s26 }
  0x1d   : > { %p1677_p2 = pneg %p1580_p1 }
  0x1e   : > { %p1696_p6 = por %p1695_p11, %p1694_p10 }
  0x1f   : > { %p1689_p4 = pnand %p1687_p3, %p1677_p2 }
  0x21   : > { %p1690_p7 = pneg %p1689_p4 }
  0x23   : > { %p1697_p8 = pnand %p1696_p6, %p1690_p7 }
  0x25   : > { %1700 = shalt.err (!%p1697_p8)
}
  0x26   : > { %s2288_s3 = sld [smem:[#allocation22_spill]]  ;;  %p1431_p9 = scmp.ge.s32.totalorder %s1817_s24, 2 }
  0x28   : > { %462 = sbr.rel (%p1431_p9) target bundleno = 59 (0x3b), region = 64 }
  0x2c   : > { %1582 = dma.hbm_to_vmem [thread:$0]  (!%p1580_p1), %s2288_s3, 32, %s432_s28, [#allocation5]  }
  0x2d   : > { %465 = sbr.rel (!%p1956_p5) target bundleno = 59 (0x3b), region = 68  ;;  %s467_s20 = sand.u32 (%p1956_p5), 1, %s1813_s23  }
  0x2e   : > { %s1433_s27 = sshll.u32 (%p1956_p5), %s1817_s24, 2  ;;  %s1432_s26 = sshll.u32 (%p1956_p5), %s467_s20, 6 }
  0x2f   : > { %s1995_s14 = scalar_lea.vmem (%p1956_p5), %s2263_s12, %s1433_s27  ;;  %s469_s30 = scalar_lea.vmem (%p1956_p5), [#allocation7], %s1432_s26 }
  0x30   : > { %v488_v0 = vld [vmem:[%s1995_s14] sm:$0xf] (%p1956_p5)  ;;  %v490_v1 = vld [vmem:[%s1995_s14 + $0x8] sm:$0xf] (%p1956_p5)  ;;  %v492_v2 = vld [vmem:[%s1995_s14 + $0x10] sm:$0xf] (%p1956_p5) }
  0x31   : > { %489 = vst [vmem:[%s469_s30] sm:$0xf] (%p1956_p5), %v488_v0  ;;  %491 = vst [vmem:[%s469_s30 + $0x4] sm:$0xf] (%p1956_p5), %v490_v1  ;;  %v494_v3 = vld [vmem:[%s1995_s14 + $0x18] sm:$0xf] (%p1956_p5) }
  0x32   : > { %v496_v4 = vld [vmem:[%s1995_s14 + $0x20] sm:$0xf]  ;;  %493 = vst [vmem:[%s469_s30 + $0x8] sm:$0xf] %v492_v2  ;;  %495 = vst [vmem:[%s469_s30 + $0xc] sm:$0xf] %v494_v3 }
  0x33   : > { %497 = vst [vmem:[%s469_s30 + $0x10] sm:$0xf] %v496_v4  ;;  %v498_v5 = vld [vmem:[%s1995_s14 + $0x28] sm:$0xf]  ;;  %v500_v6 = vld [vmem:[%s1995_s14 + $0x30] sm:$0xf] }
  0x34   : > { %v502_v7 = vld [vmem:[%s1995_s14 + $0x38] sm:$0xf]  ;;  %499 = vst [vmem:[%s469_s30 + $0x14] sm:$0xf] %v498_v5  ;;  %501 = vst [vmem:[%s469_s30 + $0x18] sm:$0xf] %v500_v6 }
  0x35   : > { %503 = vst [vmem:[%s469_s30 + $0x1c] sm:$0xf] %v502_v7  ;;  %v504_v8 = vld [vmem:[%s1995_s14 + $0x40] sm:$0xf]  ;;  %v506_v9 = vld [vmem:[%s1995_s14 + $0x48] sm:$0xf] }
  0x36   : > { %v508_v10 = vld [vmem:[%s1995_s14 + $0x50] sm:$0xf]  ;;  %505 = vst [vmem:[%s469_s30 + $0x20] sm:$0xf] %v504_v8  ;;  %507 = vst [vmem:[%s469_s30 + $0x24] sm:$0xf] %v506_v9 }
  0x37   : > { %509 = vst [vmem:[%s469_s30 + $0x28] sm:$0xf] %v508_v10  ;;  %v510_v11 = vld [vmem:[%s1995_s14 + $0x58] sm:$0xf]  ;;  %v512_v12 = vld [vmem:[%s1995_s14 + $0x60] sm:$0xf] }
  0x38   : > { %v514_v13 = vld [vmem:[%s1995_s14 + $0x68] sm:$0xf]  ;;  %511 = vst [vmem:[%s469_s30 + $0x2c] sm:$0xf] %v510_v11  ;;  %513 = vst [vmem:[%s469_s30 + $0x30] sm:$0xf] %v512_v12 }
  0x39   : > { %515 = vst [vmem:[%s469_s30 + $0x34] sm:$0xf] %v514_v13  ;;  %v516_v14 = vld [vmem:[%s1995_s14 + $0x70] sm:$0xf]  ;;  %v518_v15 = vld [vmem:[%s1995_s14 + $0x78] sm:$0xf] }
  0x3a   : > { %517 = vst [vmem:[%s469_s30 + $0x38] sm:$0xf] %v516_v14  ;;  %519 = vst [vmem:[%s469_s30 + $0x3c] sm:$0xf] %v518_v15 }
  0x3b PF: > { %584 = sbr.rel (%p1974_p13) target bundleno = 1901 (0x76d), region = 113 }
  0x40   : > { %1792 = dma.done.wait (%p1587_p12), [#allocation5], 32  }
  0x41   : > { %1794 = vsyncadd (%p1587_p12), [#allocation5], 4294967264  ;;  %s2020_s21 = sand.u32 1, %s1809_s22   ;;  %p643_p3 = scmp.lt.s32.totalorder %s1938_s25, 1 }
  0x42   : > { %s1436_s14 = sshll.u32 %s2020_s21, 6  ;;  %s1437_s27 = sshll.u32 %s2020_s21, 1 }
  0x43   : > { %s2026_s0 = scalar_select %p643_p3, %s1938_s25, 1 }
  0x44   : > { %s2032_s29 = scalar_lea.vmem [#allocation7], %s1436_s14  ;;  %s2034_s20 = scalar_lea.vmem [#allocation8], %s1437_s27 }
  0x45   : > { %p2289_p5 = scmp.ne.s32.totalorder %s1938_s25, 0 }
  0x46   : > { %s2290_s26 = sld [smem:[#allocation19_spill]] (!%p2289_p5)  ;;  %s1824_s27 = smov (!%p2289_p5), 32  }
  0x47   : > { %650 = sbr.rel (%p2289_p5) target bundleno = 1654 (0x676), region = 125  ;;  %s2291_s2 = sld [smem:[#allocation21_spill]] (!%p2289_p5) }
  0x48   : > { %s2292_s1 = sld [smem:[#allocation20_spill]] (!%p2289_p5)  ;;  %s1825_s3 = smov (!%p2289_p5), 64  }
  0x49   : > { %s1826_s18 = smov (!%p2289_p5), 96  }
  0x4c   : > { %v1638_v16 = vld [vmem:[%s2256_s5 + $0x28] sm:$0xff]   ;;  %v1820_v17 = vmov 0.0   ;;  %v1639_v18 = vld [vmem:[%s2256_s5 + $0x20] sm:$0xff]   ;;  %vm1821_vm0 = vmmov 0   ;;  %v1640_v19 = vld [vmem:[%s2256_s5 + $0x18] sm:$0xff]   ;;  %vm713_vm1 = vcmask 785408   ;;  %v780_v38 = vlaneseq }
  0x4d   : > { %1505 = vmatprep.subr.bf16.mxu0 %v1820_v17  ;;  %1521 = vmatprep.subr.bf16.mxu1 %v1820_v17  ;;  %v1641_v20 = vld [vmem:[%s2256_s5 + $0x10] sm:$0xff]   ;;  %v1642_v21 = vld [vmem:[%s2256_s5 + $0x8] sm:$0xff]   ;;  %v1643_v22 = vld [vmem:[%s2256_s5] sm:$0xff]   ;;  %vm769_vm2 = vcmask 261120   ;;  %vm790_vm3 = vcmask 1041409   ;;  %vm794_vm5 = vcmask 58368  }
  0x4e   : > { %1506 = vmatpush3.bf16.msra.mxu0 %v1638_v16  ;;  %1517 = vmatprep.mubr.msk.bf16.mxu0 %vm1821_vm0, %v1820_v17  ;;  %v1644_v23 = vld [vmem:[%s2290_s26] sm:$0xff]   ;;  %v781_v39 = vand.u32 127, %v780_v38  ;;  %v2082_v40 = vshrl.u32 %v780_v38, 7  ;;  %v1645_v62 = vld [vmem:[%s2261_s10 + $0x8] sm:$0xff]   ;;  %vm845_vm6 = vcmask 253952   ;;  %v1649_v6 = vld [vmem:[%s2259_s8 + $0x18] sm:$0xff]  }
  0x4f   : > { %1507 = vmatprep.subr.bf16.mxu0 %v1820_v17  ;;  %1533 = vmatprep.mubr.msk.bf16.mxu1 %vm1821_vm0, %v1820_v17  ;;  %v1439_v24 = vld [vmem:[%s2257_s6] ss:$0 sm:$0xff]  ;;  %v1647_v63 = vld [vmem:[%s2259_s8 + $0x28] sm:$0xff]   ;;  %v2103_v1 = vld [vmem:[#allocation4] sm:$0x3]  ;;  %vm825_vm7 = vcmask 523264  }
  0x50   : > { %v1448_v31 = vld [vmem:[%s2258_s7] ss:$0 sm:$0xff]  ;;  %v784_v42 = vsub.s32 %v781_v39, %v2082_v40  ;;  %v816_v56 = vsub.s32 1, %v2082_v40  ;;  %v809_v57 = vsub.s32 0, %v2082_v40  ;;  %1522 = vmatpush3.bf16.msra.mxu1 %v1647_v63  ;;  %v1028_v5 = vpack.c.bf16 %v2103_v1, %v2103_v1  ;;  %v1650_v7 = vld [vmem:[%s2259_s8 + $0x10] sm:$0xff]   ;;  %v822_v8 = vld [vmem:[%s2292_s1 + $0x8] sm:$0xff] }
  0x51   : > { %v776_v43 = vld [vmem:[%s2255_s4] sm:$0x3]  ;;  %1523 = vmatprep.subr.bf16.mxu1 %v1820_v17  ;;  %vm927_vm8 = vcmask 778496   ;;  %vm1129_vm9 = vcmask 254976   ;;  %vm1170_vm10 = vcmask 1041152  }
  0x52   : > { %1508 = vmatpush3.bf16.msra.mxu0 %v1639_v18  ;;  %vm777_vm4 = vcmp.eq.f32.partialorder %v776_v43, 0.0  ;;  %v1646_v0 = vld [vmem:[%s2261_s10] sm:$0xff]  }
  0x53   : > { %1509 = vmatprep.subr.bf16.mxu0 %v1820_v17  ;;  %v840_v2 = vld [vmem:[%s2291_s2] sm:$0x3] }
  0x54   : > { %v1648_v3 = vld [vmem:[%s2259_s8 + $0x20] sm:$0xff]   ;;  %v2112_v4 = vpack.c.bf16 %v840_v2, %v840_v2 }
  0x55   : > { %1524 = vmatpush3.bf16.msra.mxu1 %v1648_v3  ;;  %v821_v9 = vld [vmem:[%s2292_s1] sm:$0xff] }
  0x56   : > { %1510 = vmatpush3.bf16.msra.mxu0 %v1640_v19  ;;  %846 = vst.msk [vmem:[#allocation2] sm:$0x1] %vm845_vm6, %v2112_v4  ;;  %1525 = vmatprep.subr.bf16.mxu1 %v1820_v17  ;;  %v1822_v19 = vmov 1966171168   ;;  %v1449_v63 = vld [vmem:[%s2260_s9] ss:$0 sm:$0xff] }
  0x57   : > { %1511 = vmatprep.subr.bf16.mxu0 %v1820_v17 }
  0x59   : > { %1526 = vmatpush3.bf16.msra.mxu1 %v1649_v6 }
  0x5a   : > { %1512 = vmatpush3.bf16.msra.mxu0 %v1641_v20  ;;  %1527 = vmatprep.subr.bf16.mxu1 %v1820_v17  ;;  %v850_v20 = vunpack.c.l.s4 %v1822_v19 }
  0x5b   : > { %1513 = vmatprep.subr.bf16.mxu0 %v1820_v17 }
  0x5d   : > { %1528 = vmatpush3.bf16.msra.mxu1 %v1650_v7 }
  0x5e   : > { %1514 = vmatpush3.bf16.msra.mxu0 %v1642_v21  ;;  %1529 = vmatprep.subr.bf16.mxu1 %v1820_v17 }
  0x5f   : > { %1515 = vmatprep.subr.bf16.mxu0 %v1820_v17 }
  0x62   : > { %1516 = vmatpush3.bf16.msra.mxu0 %v1643_v22 }
  0x63   : > { %1537 = vmatprep.subr.bf16.mxu0 %v1820_v17 }
  0x65   : > { %1518 = vmatmul.mubr.msk.bf16.vlgmr.msra.gmra.mxu0 %vm713_vm1, %v1644_v23 }
  0x66   : > { %1541 = vmatprep.mubr.msk.bf16.mxu0 %vm1821_vm0, %v1820_v17  ;;  %1538 = vmatpush3.bf16.msra.mxu0 %v1645_v62 }
  0x67   : > { %1539 = vmatprep.subr.bf16.mxu0 %v1820_v17 }
  0x6a   : > { %1540 = vmatpush3.bf16.msra.mxu0 %v1646_v0 }
  0x6d   : > { %1542 = vmatmul.mubr.msk.bf16.vlgmr.msra.gmra.mxu0 %vm769_vm2, %v1028_v5 }
 0x125   : > { %v751_v25 = vpop.f32.mrf.mxu0 }
 0x126   : > { %v752_v26 = vadd.f32 %v1439_v24, %v751_v25  ;;  %v851_v25 = vunpack.c.0.s8 %v850_v20 }
 0x127   : > { %v1519_v27 = vpop.f32.mrf.mxu0 }
 0x128   : > { %1653 = vtanh.f32 %v752_v26  ;;  %v1823_v26 = vmov 1935823168  }
 0x129   : > { %v754_v28 = vpop.f32.mrf.mxu0  ;;  %v878_v27 = vunpack.c.l.s4 %v1823_v26 }
 0x12a   : > { %v755_v29 = vadd.f32 %v1439_v24, %v754_v28 }
 0x12b   : > { %v1520_v30 = vpop.f32.mrf.mxu0 }
 0x12c   : > { %1655 = vtanh.f32 %v755_v29 }
 0x135   : > { %v1654_v32 = vpop.eup %1653 }
 0x136   : > { %v767_v33 = vmul.f32 %v1654_v32, %v1448_v31  ;;  %v2136_v32 = vsub.s32 %v851_v25, %v2082_v40 }
 0x138   : > { %v770_v34 = vsel %vm769_vm2, %v767_v33, 0.0  ;;  %v879_v33 = vunpack.c.0.s8 %v878_v27  ;;  %v1159_v26 = vrot.slane %v2112_v4, %v2136_v32 }
 0x139   : > { %v1656_v35 = vpop.eup %1655  ;;  %771 = vadd.xlane.f32.xlu0 %v770_v34 }
 0x13a   : > { %v768_v36 = vmul.f32 %v1656_v35, %v1448_v31  ;;  %v882_v38 = vsub.s32 %v879_v33, %v2082_v40  ;;  %v1652_v40 = vld [vmem:[%s2259_s8] sm:$0xff]   ;;  %v1166_v27 = vrot.slane %v1159_v26, %v2136_v32 }
 0x13c   : > { %v773_v37 = vsel %vm769_vm2, %v768_v36, 0.0 }
 0x13d   : > { %774 = vadd.xlane.f32.xlu0 %v773_v37 }
 0x1c2   : > { %v772_v41 = vpop.xlane.xlu0 %771 }
 0x1c3   : > { %v785_v45 = vrot.slane %v772_v41, %v784_v42 }
 0x1c6   : > { %v775_v44 = vpop.xlane.xlu0 %774 }
 0x1c7   : > { %v789_v46 = vrot.slane %v775_v44, %v784_v42 }
 0x1c9   : > { %v791_v47 = vsel %vm790_vm3, %v789_v46, %v785_v45  ;;  %v1651_v46 = vld [vmem:[%s2259_s8 + $0x8] sm:$0xff]  }
 0x1ca   : > { %v793_v48 = vsel %vm777_vm4, -1e+10, %v791_v47  ;;  %1530 = vmatpush3.bf16.msra.mxu1 %v1651_v46 }
 0x1cb   : > { %v795_v49 = vsel %vm794_vm5, %v793_v48, -inf  ;;  %1531 = vmatprep.subr.bf16.mxu1 %v1820_v17 }
 0x1cc   : > { %796 = vmax.xlane.f32.xlu1 %v795_v49 }
 0x1ce   : > { %1532 = vmatpush3.bf16.msra.mxu1 %v1652_v40 }
 0x255   : > { %v797_v50 = vpop.xlane.xlu1 %796 }
 0x256   : > { %v798_v51 = vsub.f32 %v793_v48, %v797_v50 }
 0x258   : > { %v799_v52 = vmul.f32 1.442695, %v798_v51 }
 0x25a   : > { %1657 = vpow2.f32 %v799_v52 }
 0x267   : > { %v1658_v53 = vpop.eup %1657 }
 0x268   : > { %v801_v54 = vsel %vm794_vm5, %v1658_v53, 0.0 }
 0x269   : > { %802 = vadd.xlane.f32.xlu1 %v801_v54 }
 0x2f2   : > { %v803_v55 = vpop.xlane.xlu1 %802 }
 0x2f3   : > { %1659 = vrcp.f32 %v803_v55 }
 0x300   : > { %v1660_v58 = vpop.eup %1659 }
 0x301   : > { %v805_v59 = vmul.f32 %v1660_v58, %v1658_v53 }
 0x303   : > { %v817_v60 = vrot.slane %v805_v59, %v816_v56  ;;  %806 = vst.msk [vmem:[#allocation11] sm:$0x3] %vm794_vm5, %v805_v59  ;;  %v810_v61 = vrot.slane %v805_v59, %v809_v57  ;;  %v1457_v56 = vld [vmem:[%s2262_s11] ss:$0 sm:$0xff]  ;;  %v1089_v57 = vpop.f32.mrf.mxu0 }
 0x304   : > { %v1090_v58 = vadd.f32 %v1457_v56, %v1089_v57 }
 0x305   : > { %819 = vbcast.lane.b32.xlu0 %v817_v60, 256  ;;  %812 = vbcast.lane.b32.xlu1 %v810_v61, 256  ;;  %v1543_v17 = vpop.f32.mrf.mxu0 }
 0x307   : > { %v1092_v59 = vpop.f32.mrf.mxu0 }
 0x309   : > { %v1544_v60 = vpop.f32.mrf.mxu0 }
 0x377   : > { %v820_v10 = vpop.permute.xlu0 %819  ;;  %v813_v11 = vpop.permute.xlu1 %812 }
 0x378   : > { %v824_v12 = vmul.f32 %v822_v8, %v820_v10  ;;  %v823_v13 = vmul.f32 %v821_v9, %v813_v11 }
 0x37a   : > { %v833_v14 = vsel %vm825_vm7, %v824_v12, 0.0  ;;  %v826_v15 = vsel %vm825_vm7, %v823_v13, 0.0 }
 0x37b   : > { %v834_v16 = vrot.slane %v833_v14, 4  ;;  %v827_v18 = vrot.slane %v826_v15, 4 }
 0x37d   : > { %v835_v21 = vadd.f32 %v834_v16, %v833_v14  ;;  %v828_v22 = vadd.f32 %v827_v18, %v826_v15 }
 0x37f   : > { %v836_v23 = vrot.slane %v835_v21, 2  ;;  %v829_v24 = vrot.slane %v828_v22, 2 }
 0x381   : > { %v837_v28 = vadd.f32 %v836_v23, %v835_v21  ;;  %v830_v29 = vadd.f32 %v829_v24, %v828_v22 }
 0x383   : > { %v838_v30 = vrot.slane %v837_v28, 1  ;;  %v831_v31 = vrot.slane %v830_v29, 1 }
 0x385   : > { %v839_v34 = vadd.f32 %v838_v30, %v837_v28  ;;  %v832_v35 = vadd.f32 %v831_v31, %v830_v29 }
 0x387   : > { %v844_v36 = vpack.c.bf16 %v839_v34, %v839_v34  ;;  %v843_v37 = vpack.c.bf16 %v832_v35, %v832_v35 }
 0x389   : > { %v869_v39 = vrot.slane %v844_v36, %v2136_v32  ;;  %v855_v41 = vrot.slane %v843_v37, %v2136_v32 }
 0x38b   : > { %v876_v42 = vrot.slane %v869_v39, %v2136_v32  ;;  %v862_v43 = vrot.slane %v855_v41, %v2136_v32 }
 0x38d   : > { %v897_v44 = vrot.slane %v876_v42, %v882_v38  ;;  %v883_v45 = vrot.slane %v862_v43, %v882_v38 }
 0x38f   : > { %v890_v47 = vrot.slane %v883_v45, %v882_v38  ;;  %v904_v48 = vrot.slane %v897_v44, %v882_v38 }
 0x391   : > { %v906_v49 = vunpack.c.l.b16 %v904_v48  ;;  %v905_v50 = vunpack.c.l.b16 %v890_v47 }
 0x393   : > { %v907_v51 = vrot.slane %v906_v49, 7 }
 0x395   : > { %v908_v52 = vsel %vm790_vm3, %v907_v51, %v905_v50 }
 0x396   : > { %v909_v53 = vpack.c.b16 %v908_v52, %v908_v52 }
 0x398   : > { %v916_v54 = vrot.slane %v909_v53, %v2136_v32 }
 0x39a   : > { %v923_v55 = vrot.slane %v916_v54, %v2136_v32 }
 0x39c   : > { %924 = vrot.lane.b32.xlu1 %v923_v55, %s1824_s27 }
 0x3a0   : > { %1103 = vrot.lane.b32.xlu1 %v1090_v58, %s1825_s3 }
 0x40e   : > { %v925_v61 = vpop.permute.xlu1 %924 }
 0x40f   : > { %928 = vst.msk [vmem:[#allocation2] sm:$0x1] %vm927_vm8, %v925_v61 }
 0x412   : > { %v1104_v11 = vpop.permute.xlu1 %1103 }
 0x416   : > { %v929_v62 = vld [vmem:[#allocation2] sm:$0x1] }
 0x417   : > { %1534 = vmatmul.mubr.msk.bf16.vlgmr.msra.gmra.mxu1 %vm713_vm1, %v929_v62 }
 0x4d7   : > { %v1022_v0 = vpop.f32.mrf.mxu1 }
 0x4d8   : > { %v1023_v2 = vadd.f32 %v1449_v63, %v1022_v0 }
 0x4d9   : > { %v1535_v3 = vpop.f32.mrf.mxu1 }
 0x4da   : > { %v1095_v5 = vadd.f32 %v1090_v58, %v1023_v2 }
 0x4db   : > { %v1025_v6 = vpop.f32.mrf.mxu1 }
 0x4dc   : > { %v1461_v7 = vmul.f32 -1.442695, %v1095_v5 }
 0x4dd   : > { %v1536_v8 = vpop.f32.mrf.mxu1 }
 0x4de   : > { %1661 = vpow2.f32 %v1461_v7 }
 0x4eb   : > { %v1662_v9 = vpop.eup %1661 }
 0x4ec   : > { %v1099_v10 = vadd.f32 1.0, %v1662_v9 }
 0x4ee   : > { %1663 = vrcp.f32 %v1099_v10 }
 0x4fb   : > { %v1664_v12 = vpop.eup %1663 }
 0x4fc   : > { %v1106_v13 = vmul.f32 %v1664_v12, %v1104_v11  ;;  %v1113_v19 = vsub.f32 1.0, %v1664_v12 }
 0x4fe   : > { %1108 = vrot.lane.b32.xlu0 %v1106_v13, %s1825_s3 }
 0x502   : > { %1120 = vrot.lane.b32.xlu0 %v2103_v1, %s1824_s27 }
 0x570   : > { %v1109_v14 = vpop.permute.xlu0 %1108 }
 0x571   : > { %v1111_v15 = vadd.f32 %v1109_v14, %v1023_v2 }
 0x573   : > { %1665 = vtanh.f32 %v1111_v15 }
 0x574   : > { %v1121_v18 = vpop.permute.xlu0 %1120 }
 0x575   : > { %v1123_v21 = vmul.f32 %v1664_v12, %v1121_v18 }
 0x580   : > { %v1666_v16 = vpop.eup %1665 }
 0x581   : > { %1115 = vrot.lane.b32.xlu1 %v1666_v16, %s1826_s18 }
 0x5f3   : > { %v1116_v20 = vpop.permute.xlu1 %1115 }
 0x5f4   : > { %v1118_v22 = vmul.f32 %v1116_v20, %v1113_v19 }
 0x5f6   : > { %v1124_v23 = vadd.f32 %v1123_v21, %v1118_v22 }
 0x5f8   : > { %v1131_v24 = vpack.c.bf16 %v1124_v23, %v1124_v23  ;;  %1126 = vrot.lane.b32.xlu0 %v1124_v23, %s1826_s18 }
 0x5fa   : > { %v1139_v25 = vrot.slane %v1131_v24, %v2136_v32 }
 0x5fc   : > { %v1146_v1 = vrot.slane %v1139_v25, %v2136_v32 }
 0x5fe   : > { %1147 = vrot.lane.b32.xlu1 %v1146_v1, %s1826_s18 }
 0x602   : > { %1167 = vrot.lane.b32.xlu1 %v1166_v27, %s1826_s18 }
 0x66a   : > { %v1127_v28 = vpop.permute.xlu0 %1126 }
 0x66b   : > { %1130 = vst.msk [vmem:[#allocation9] sm:$0x3] %vm1129_vm9, %v1127_v28 }
 0x670   : > { %v1148_v29 = vpop.permute.xlu1 %1147 }
 0x671   : > { %1150 = vst.msk [vmem:[#allocation3] sm:$0x1] %vm845_vm6, %v1148_v29 }
 0x672   : > { %1151 = vst.msk [vmem:[#allocation3] sm:$0x1] %vm927_vm8, %v925_v61 }
 0x674   : > { %v1168_v30 = vpop.permute.xlu1 %1167 }
 0x675   : > { %1171 = vst.msk [vmem:[#allocation3] sm:$0x1] %vm1170_vm10, %v1168_v30 }
 0x676 PF: > { %v1667_v4 = vld [vmem:[%s2032_s29 + $0x38] sm:$0xff]   ;;  %v1827_v31 = vmov 0.0   ;;  %v1668_v32 = vld [vmem:[%s2032_s29 + $0x30] sm:$0xff]   ;;  %vm1828_vm11 = vmmov 0   ;;  %v1669_v33 = vld [vmem:[%s2032_s29 + $0x28] sm:$0xff]   ;;  %s1829_s14 = smov [#allocation9]  }
 0x677   : > { %1545 = vmatprep.subr.bf16.mxu0 %v1827_v31  ;;  %1561 = vmatprep.mubr.msk.bf16.mxu0 %vm1828_vm11, %v1827_v31  ;;  %v1670_v34 = vld [vmem:[%s2032_s29 + $0x20] sm:$0xff]   ;;  %v1671_v35 = vld [vmem:[%s2032_s29 + $0x18] sm:$0xff]   ;;  %v1672_v36 = vld [vmem:[%s2032_s29 + $0x10] sm:$0xff]   ;;  %s1310_s27 = sshll.u32 %s1829_s14, 4  ;;  %p2293_p10 = scmp.eq.s32.totalorder %s1938_s25, 1  ;;  %s1311_s27 = int_to_ptr.vmem [resolvable:$true] %s1310_s27 }
 0x678   : > { %1546 = vmatpush3.bf16.msra.mxu0 %v1667_v4  ;;  %v1673_v37 = vld [vmem:[%s2032_s29 + $0x8] sm:$0xff]   ;;  %v1674_v38 = vld [vmem:[%s2032_s29] sm:$0xff]   ;;  %s1701_s19 = scalar_lea.vmem %s1311_s27, 32  ;;  %p1708_p13 = scmp.lt.s32.totalorder %s1311_s27, %s1311_s27 }
 0x679   : > { %1547 = vmatprep.subr.bf16.mxu0 %v1827_v31  ;;  %p1702_p6 = scmp.ne.s32.totalorder %s1311_s27, %s1701_s19  ;;  %p1709_p0 = scmp.lt.s32.totalorder %s1701_s19, %s1701_s19 }
 0x67b   : > { %p1703_p11 = pnand %p1702_p6, %p2293_p10  ;;  %p1710_p1 = por %p1709_p0, %p1708_p13 }
 0x67c   : > { %1548 = vmatpush3.bf16.msra.mxu0 %v1668_v32  ;;  %v1172_v39 = vld [vmem:[#allocation3] sm:$0x1] }
 0x67d   : > { %1549 = vmatprep.subr.bf16.mxu0 %v1827_v31  ;;  %p1704_p12 = pneg %p1703_p11 }
 0x67f   : > { %p1711_p2 = pnand %p1710_p1, %p1704_p12 }
 0x680   : > { %1550 = vmatpush3.bf16.msra.mxu0 %v1669_v33 }
 0x681   : > { %1551 = vmatprep.subr.bf16.mxu0 %v1827_v31 }
 0x684   : > { %1552 = vmatpush3.bf16.msra.mxu0 %v1670_v34 }
 0x685   : > { %1553 = vmatprep.subr.bf16.mxu0 %v1827_v31 }
 0x688   : > { %1554 = vmatpush3.bf16.msra.mxu0 %v1671_v35 }
 0x689   : > { %1555 = vmatprep.subr.bf16.mxu0 %v1827_v31 }
 0x68c   : > { %1556 = vmatpush3.bf16.msra.mxu0 %v1672_v36 }
 0x68d   : > { %1557 = vmatprep.subr.bf16.mxu0 %v1827_v31 }
 0x690   : > { %1558 = vmatpush3.bf16.msra.mxu0 %v1673_v37 }
 0x691   : > { %1559 = vmatprep.subr.bf16.mxu0 %v1827_v31 }
 0x694   : > { %1560 = vmatpush3.bf16.msra.mxu0 %v1674_v38 }
 0x697   : > { %1562 = vmatmul.mubr.bf16.vlgmr.msra.gmra.mxu0 %v1172_v39 }
 0x698   : > { %1714 = shalt.err (!%p1711_p2)
}
 0x699   : > { %p2294_p4 = pmov %p2293_p10  ;;  %s1830_s3 = smov [#allocation11]  }
 0x69a   : > { %s1321_s28 = sshll.u32 %s1830_s3, 4  ;;  %s1322_s28 = int_to_ptr.vmem [resolvable:$true] %s1321_s28 }
 0x69b   : > { %1571 = dma.vmem_to_hbm [thread:$0]  (%p2294_p4), %s1311_s27, 32, %s2266_s15, [#allocation10]  }
 0x69c   : > { %s1725_s30 = scalar_lea.vmem %s1322_s28, 32  ;;  %p2295_p8 = pmov %p2294_p4 }
 0x69d   : > { %p1726_p7 = scmp.ne.s32.totalorder %s1322_s28, %s1725_s30  ;;  %p1732_p6 = scmp.lt.s32.totalorder %s1322_s28, %s1322_s28 }
 0x69e   : > { %p1733_p10 = scmp.lt.s32.totalorder %s1725_s30, %s1725_s30 }
 0x69f   : > { %p1727_p3 = pnand %p1726_p7, %p2295_p8 }
 0x6a0   : > { %p1734_p11 = por %p1733_p10, %p1732_p6 }
 0x6a1   : > { %p1728_p5 = pneg %p1727_p3 }
 0x6a3   : > { %p1735_p12 = pnand %p1734_p11, %p1728_p5 }
 0x6a5   : > { %1738 = shalt.err (!%p1735_p12)
}
 0x6a6   : > { %p2296_p13 = pmov %p2294_p4  ;;  %s2297_s29 = scalar_lea.vmem %s2264_s13, %s2026_s0 }
 0x6a7   : > { %v1462_v41 = vld [vmem:[%s2297_s29] ss:$0 sm:$0xff]  ;;  %s1472_s26 = sshll.u32 %s1938_s25, 5  ;;  %s1299_s3 = sshll.u32 %s2034_s20, 4  ;;  %s2205_s3 = int_to_ptr.vmem [resolvable:$true] %s1299_s3 }
 0x6a8   : > { %1573 = dma.vmem_to_hbm [thread:$0]  (%p2296_p13), %s1322_s28, 32, %s2267_s16, [#allocation10]  }
 0x6a9   : > { %s2298_s2 = sld [smem:[#allocation23_spill]]  ;;  %s1286_s28 = scalar_lea.sflag [#allocation6], %s2020_s21 }
 0x6aa   : > { %s1749_s0 = scalar_lea.vmem %s2205_s3, 32  ;;  %p2299_p1 = scmp.ne.s32.totalorder %s2284_s17, 0 }
 0x6ab   : > { %p1750_p0 = scmp.ne.s32.totalorder %s2205_s3, %s1749_s0  ;;  %s1831_s14 = smov [#allocation8]  }
 0x6ac   : > { %s1753_s27 = sshll.u32 %s1831_s14, 4  ;;  %s1754_s27 = int_to_ptr.vmem [resolvable:$false] %s1753_s27 }
 0x6ad   : > { %p1751_p2 = pnand %p1750_p0, %p2299_p1  ;;  %s1755_s1 = scalar_lea.vmem %s1754_s27, 64 }
 0x6ae   : > { %p1756_p7 = scmp.lt.s32.totalorder %s2205_s3, %s1754_s27  ;;  %p1757_p8 = scmp.lt.s32.totalorder %s1755_s1, %s1749_s0 }
 0x6af   : > { %s2203_s18 = scalar_lea.hbm %s2298_s2, %s1472_s26  ;;  %p1752_p4 = pneg %p1751_p2 }
 0x6b0   : > { %p1758_p3 = por %p1757_p8, %p1756_p7 }
 0x6b2   : > { %p1759_p5 = pnand %p1758_p3, %p1752_p4 }
 0x757   : > { %v1278_v42 = vpop.f32.mrf.mxu0 }
 0x758   : > { %v1279_v43 = vadd.f32 %v1462_v41, %v1278_v42 }
 0x759   : > { %v1563_v44 = vpop.f32.mrf.mxu0 }
 0x75a   : > { %1284 = vst [vmem:[%s2034_s20] sm:$0x3] %v1279_v43 }
 0x75b   : > { %v1281_v45 = vpop.f32.mrf.mxu0 }
 0x75c   : > { %1762 = shalt.err (!%p1759_p5)
}
 0x75d   : > { %s1763_s20 = scalar_lea.hbm %s2203_s18, 32  ;;  %s1767_s29 = scalar_lea.hbm %s2298_s2, 64 }
 0x75e   : > { %p1764_p6 = scmp.ne.s32.totalorder %s2203_s18, %s1763_s20  ;;  %p1768_p12 = scmp.lt.s32.totalorder %s2203_s18, %s2298_s2 }
 0x75f   : > { %p1769_p13 = scmp.lt.s32.totalorder %s1767_s29, %s1763_s20 }
 0x760   : > { %p1765_p10 = pnand %p1764_p6, %p2299_p1 }
 0x761   : > { %p1770_p0 = por %p1769_p13, %p1768_p12 }
 0x762   : > { %p1766_p11 = pneg %p1765_p10 }
 0x764   : > { %p1771_p2 = pnand %p1770_p0, %p1766_p11 }
 0x766   : > { %1774 = shalt.err (!%p1771_p2)
}
 0x767   : > { %1569 = dma.vmem_to_hbm [thread:$0]  (%p2299_p1), %s2205_s3, 32, %s2203_s18, %s1286_s28   ;;  %v1564_v46 = vpop.f32.mrf.mxu0 }
 0x768   : > { %p2300_p4 = scmp.eq.s32.totalorder %s1938_s25, 1 }
 0x76a   : > { %1796 = dma.done.wait (%p2300_p4), [#allocation10], 64   ;;  %p2301_p7 = pmov %p2300_p4 }
 0x76c   : > { %1798 = vsyncadd (%p2301_p7), [#allocation10], 4294967232 }
 0x76d PF: > { %s2302_s0 = sld [smem:[#allocation15_spill]] }
 0x76e   : > { %s2303_s14 = sld [smem:[#allocation18_spill]] }
 0x773   : > { %s1341_s27 = sand.u32 1, %s2302_s0  }
 0x774   : > { %p2304_p8 = scmp.ne.s32.totalorder %s2303_s14, 0  ;;  %s1342_s17 = scalar_lea.sflag [#allocation6], %s1341_s27 }
 0x776   : > { %p1584_p3 = pnand %p1431_p9, %p2304_p8 }
 0x778   : > { %p1585_p5 = pneg %p1584_p3 }
 0x77a   : > { %1800 = dma.done.wait (%p1585_p5), %s1342_s17, 32  }
 0x77b   : > { %1802 = vsyncadd (%p1585_p5), %s1342_s17, 4294967264  ;;  %s2305_s24 = sld [smem:[#allocation16_spill]]  ;;  %s2307_s21 = smov %s1809_s22 }
 0x77c   : > { %s2306_s3 = sld [smem:[#allocation17_spill]]  ;;  %s2308_s22 = smov %s1813_s23 }
 0x781   : > { %p29_p1 = scmp.ge.s32.totalorder %s2305_s24, 4  }
 0x782   : > { %s2309_s23 = smov %s2306_s3 }
 0x783   :  { %31 = sbr.rel (!%p29_p1) target bundleno = 11 (0xb), region = 185 }
 0x788   :  { %1347 = vsyncpa [#allocation5], 1 }
 0x789   :  { %1349 = vsyncpa [#allocation5 + $0x1], 1 }
 0x78a   :  { %1350 = vsyncpa [#allocation6], 1 }
 0x78b   :  { %1352 = vsyncpa [#allocation6 + $0x1], 1 }
 0x78c   :  { %1353 = vsyncpa [#allocation10], 1 }

</bundles_post_ra>
